<compile_context>
chip_gen: v7x
topology: tpu7x:2x2x1
jax: 0.10.0
libtpu: 0.0.40
codegen_flags: <defaults>
</compile_context>

<pallas_src>
import functools

import jax
import jax.numpy as jnp
from jax.experimental import pallas as pl
from jax.experimental.pallas import tpu as pltpu


def _lms_lstm_kernel(x_ref, h0_ref, c0_ref, w_ref, b_ref, wq_ref, bq_ref,
                     h_out_ref, c_out_ref, q_out_ref,
                     xh_scr, c_scr, *, d_input, d_hidden):
    """One fused LSTM-cell step + q-head; state carried in VMEM scratch.

    gates = [x | h] @ W_cat + b          # [B, 4H], PyTorch gate order i,f,g,o
    c_new = sigmoid(f) * c + sigmoid(i) * tanh(g)
    h_new = sigmoid(o) * tanh(c_new)
    q_new = h_new @ W_q + b_q
    """
    t = pl.program_id(1)
    H = d_hidden

    # First step of this module: load initial state into the resident scratch.
    @pl.when(t == 0)
    def _init():
        xh_scr[:, d_input:] = h0_ref[...].astype(jnp.float32)   # h state lives here
        c_scr[...] = c0_ref[...].astype(jnp.float32)

    # Stream this step's input into the [x | h] staging buffer.
    xh_scr[:, :d_input] = x_ref[...].astype(jnp.float32)

    # Single fused MXU pass over K = d_input + H.
    gates = (jnp.dot(xh_scr[...], w_ref[...],
                     preferred_element_type=jnp.float32)
             + b_ref[...])                                       # [B, 4H]

    # Full-width activation: sigmoid on all lanes, tanh selected for g lanes
    # (2 full-width EUP passes instead of 4 quarter-width ones at H=32).
    lane = jax.lax.broadcasted_iota(jnp.int32, gates.shape, 1)
    g_mask = jnp.logical_and(lane >= 2 * H, lane < 3 * H)
    act = jnp.where(g_mask, jnp.tanh(gates), jax.nn.sigmoid(gates))

    i_g = act[:, 0 * H:1 * H]
    f_g = act[:, 1 * H:2 * H]
    g_g = act[:, 2 * H:3 * H]
    o_g = act[:, 3 * H:4 * H]

    c_new = f_g * c_scr[...] + i_g * g_g
    h_new = o_g * jnp.tanh(c_new)

    # Carry state for the next step.
    xh_scr[:, d_input:] = h_new
    c_scr[...] = c_new

    # q-head; output width is padded to a lane-dense multiple of 128.
    q = (jnp.dot(h_new, wq_ref[...], preferred_element_type=jnp.float32)
         + bq_ref[...])
    q_out_ref[...] = q.astype(q_out_ref.dtype)

    # Final h/c only hit HBM once, at the end of the sequence.
    @pl.when(t == pl.num_programs(1) - 1)
    def _finalize():
        h_out_ref[...] = h_new.astype(h_out_ref.dtype)
        c_out_ref[...] = c_new.astype(c_out_ref.dtype)


def _round_up(x, m):
    return (x + m - 1) // m * m


def lms_f_dyn_sequence(x, h0, c0, w_ih, w_hh, b_ih, b_hh, w_q, b_q):
    """Run T consecutive f_dyn (LSTMCell + q-head) steps for N modules.

    Args (PyTorch parameter layouts):
      x:     [N, T, B, d_input]   per-module input stream
      h0,c0: [N, B, H]            initial recurrent state
      w_ih:  [N, 4H, d_input]     LSTMCell weight_ih
      w_hh:  [N, 4H, H]           LSTMCell weight_hh
      b_ih, b_hh: [N, 4H]         LSTMCell biases (summed here, as in PyTorch)
      w_q:   [N, d_output, H]     q-head Linear weight
      b_q:   [N, d_output]        q-head Linear bias
    Returns: h_T [N,B,H], c_T [N,B,H], q [N,T,B,d_output]
    """
    N, T, B, d_in = x.shape
    H = h0.shape[-1]
    O = w_q.shape[1]
    f32 = jnp.float32

    Bp = _round_up(max(B, 8), 8)          # fill sublanes
    Op = _round_up(max(O, 128), 128)      # lane-dense q stores

    # Pre-fuse LSTMCell weights:  gates = [x|h] @ W_cat + (b_ih + b_hh).
    w_cat = jnp.concatenate(
        [jnp.swapaxes(w_ih, 1, 2), jnp.swapaxes(w_hh, 1, 2)], axis=1
    ).astype(f32)                                            # [N, d_in+H, 4H]
    b = (b_ih + b_hh).astype(f32)[:, None, :]                # [N, 1, 4H]
    w_q_t = jnp.swapaxes(w_q, 1, 2).astype(f32)              # [N, H, O]
    w_q_p = jnp.pad(w_q_t, ((0, 0), (0, 0), (0, Op - O)))    # [N, H, Op]
    b_q_p = jnp.pad(b_q.astype(f32), ((0, 0), (0, Op - O)))[:, None, :]

    pad_b = Bp - B
    x_p = jnp.pad(x.astype(f32), ((0, 0), (0, 0), (0, pad_b), (0, 0)))
    h0_p = jnp.pad(h0.astype(f32), ((0, 0), (0, pad_b), (0, 0)))
    c0_p = jnp.pad(c0.astype(f32), ((0, 0), (0, pad_b), (0, 0)))

    kernel = functools.partial(_lms_lstm_kernel, d_input=d_in, d_hidden=H)

    flops = N * T * (2 * Bp * (d_in + H) * 4 * H + 2 * Bp * H * Op
                     + 10 * Bp * H)
    transcendentals = N * T * Bp * (2 * 4 * H + H)
    bytes_accessed = 4 * (x_p.size + h0_p.size + c0_p.size + w_cat.size
                          + b.size + w_q_p.size + b_q_p.size
                          + 2 * N * Bp * H + N * T * Bp * Op)

    h_f, c_f, q_all = pl.pallas_call(
        kernel,
        grid=(N, T),
        in_specs=[
            pl.BlockSpec((None, None, Bp, d_in), lambda n, t: (n, t, 0, 0)),  # x
            pl.BlockSpec((None, Bp, H), lambda n, t: (n, 0, 0)),              # h0
            pl.BlockSpec((None, Bp, H), lambda n, t: (n, 0, 0)),              # c0
            pl.BlockSpec((None, d_in + H, 4 * H), lambda n, t: (n, 0, 0)),    # W_cat (resident over t)
            pl.BlockSpec((None, 1, 4 * H), lambda n, t: (n, 0, 0)),           # b
            pl.BlockSpec((None, H, Op), lambda n, t: (n, 0, 0)),              # W_q (resident over t)
            pl.BlockSpec((None, 1, Op), lambda n, t: (n, 0, 0)),              # b_q
        ],
        out_specs=(
            pl.BlockSpec((None, Bp, H), lambda n, t: (n, 0, 0)),              # h_T
            pl.BlockSpec((None, Bp, H), lambda n, t: (n, 0, 0)),              # c_T
            pl.BlockSpec((None, None, Bp, Op), lambda n, t: (n, t, 0, 0)),    # q per step
        ),
        out_shape=(
            jax.ShapeDtypeStruct((N, Bp, H), f32),
            jax.ShapeDtypeStruct((N, Bp, H), f32),
            jax.ShapeDtypeStruct((N, T, Bp, Op), f32),
        ),
        scratch_shapes=[
            pltpu.VMEM((Bp, d_in + H), f32),   # [x | h] staging; h state lives in trailing cols
            pltpu.VMEM((Bp, H), f32),          # c state
        ],
        compiler_params=pltpu.CompilerParams(
            dimension_semantics=("parallel", "arbitrary")),
        cost_estimate=pl.CostEstimate(
            flops=flops, transcendentals=transcendentals,
            bytes_accessed=bytes_accessed),
    )(x_p, h0_p, c0_p, w_cat, b, w_q_p, b_q_p)

    return h_f[:, :B, :], c_f[:, :B, :], q_all[:, :, :B, :O]


def lms_f_dyn_reference(x, h0, c0, w_ih, w_hh, b_ih, b_hh, w_q, b_q):
    """Pure-JAX reference (scan over T) for numerical check."""
    H = h0.shape[-1]
    hp = jax.lax.Precision.HIGHEST

    def step(carry, x_t):
        h, c = carry
        gates = (jnp.einsum('nbd,nkd->nbk', x_t, w_ih, precision=hp)
                 + jnp.einsum('nbh,nkh->nbk', h, w_hh, precision=hp)
                 + (b_ih + b_hh)[:, None, :])
        i_g = jax.nn.sigmoid(gates[..., 0 * H:1 * H])
        f_g = jax.nn.sigmoid(gates[..., 1 * H:2 * H])
        g_g = jnp.tanh(gates[..., 2 * H:3 * H])
        o_g = jax.nn.sigmoid(gates[..., 3 * H:4 * H])
        c_new = f_g * c + i_g * g_g
        h_new = o_g * jnp.tanh(c_new)
        q = jnp.einsum('nbh,noh->nbo', h_new, w_q, precision=hp) + b_q[:, None, :]
        return (h_new, c_new), q

    (h_T, c_T), q_seq = jax.lax.scan(step, (h0, c0), jnp.swapaxes(x, 0, 1))
    return h_T, c_T, jnp.swapaxes(q_seq, 0, 1)


if __name__ == "__main__":
    # Config implied by LMS.reinit: d_input, d_hidden, d_output, batchsize,
    # N ClassState nodes, T consecutive f_dyn steps.
    N = 3          # number of ClassState modules ("nodes")
    T = 8          # sequence of f_dyn steps
    B = 2          # batchsize
    D_IN = 32      # d_input
    D_HID = 32     # d_hidden
    D_OUT = 8      # d_output

    key = jax.random.PRNGKey(0)
    k = jax.random.split(key, 10)
    scale = 1.0 / jnp.sqrt(D_HID)

    x = jax.random.normal(k[0], (N, T, B, D_IN), dtype=jnp.float32)
    h0 = jax.random.normal(k[1], (N, B, D_HID), dtype=jnp.float32)
    c0 = jax.random.normal(k[2], (N, B, D_HID), dtype=jnp.float32)

    # PyTorch LSTMCell / Linear parameter layouts.
    w_ih = jax.random.uniform(k[3], (N, 4 * D_HID, D_IN), minval=-scale, maxval=scale)
    w_hh = jax.random.uniform(k[4], (N, 4 * D_HID, D_HID), minval=-scale, maxval=scale)
    b_ih = jax.random.uniform(k[5], (N, 4 * D_HID), minval=-scale, maxval=scale)
    b_hh = jax.random.uniform(k[6], (N, 4 * D_HID), minval=-scale, maxval=scale)
    w_q = jax.random.uniform(k[7], (N, D_OUT, D_HID), minval=-scale, maxval=scale)
    b_q = jax.random.uniform(k[8], (N, D_OUT), minval=-scale, maxval=scale)

    h_T, c_T, q = lms_f_dyn_sequence(x, h0, c0, w_ih, w_hh, b_ih, b_hh, w_q, b_q)
    jax.block_until_ready((h_T, c_T, q))

    h_r, c_r, q_r = lms_f_dyn_reference(x, h0, c0, w_ih, w_hh, b_ih, b_hh, w_q, b_q)
    assert jnp.allclose(h_T, h_r, atol=1e-3, rtol=1e-3), "h mismatch"
    assert jnp.allclose(c_T, c_r, atol=1e-3, rtol=1e-3), "c mismatch"
    assert jnp.allclose(q, q_r, atol=1e-3, rtol=1e-3), "q mismatch"

    print("KERNEL_OK")
</pallas_src>

<mosaic_0001>
module attributes {stable_mosaic.version = 11 : i64} {
  func.func @_lms_lstm_kernel(%arg0: i32, %arg1: i32, %arg2: memref<1x1x8x32xf32, #tpu.memory_space<vmem>>, %arg3: memref<1x8x32xf32, #tpu.memory_space<vmem>>, %arg4: memref<1x8x32xf32, #tpu.memory_space<vmem>>, %arg5: memref<1x64x128xf32, #tpu.memory_space<vmem>>, %arg6: memref<1x1x128xf32, #tpu.memory_space<vmem>>, %arg7: memref<1x32x128xf32, #tpu.memory_space<vmem>>, %arg8: memref<1x1x128xf32, #tpu.memory_space<vmem>>, %arg9: memref<1x8x32xf32, #tpu.memory_space<vmem>>, %arg10: memref<1x8x32xf32, #tpu.memory_space<vmem>>, %arg11: memref<1x1x8x128xf32, #tpu.memory_space<vmem>>, %arg12: memref<8x64xf32, #tpu.memory_space<vmem>>, %arg13: memref<8x32xf32, #tpu.memory_space<vmem>>) attributes {dimension_semantics = [#tpu.dimension_semantics<parallel>, #tpu.dimension_semantics<arbitrary>], iteration_bounds = array<i64: 3, 8>, scalar_prefetch = 0 : i64, scratch_operands = 2 : i64, tpu.core_type = #tpu.core_type<tc>, window_params = [{transform_indices = @transform_0, window_bounds = array<i64: 1, 1, 8, 32>}, {transform_indices = @transform_1, window_bounds = array<i64: 1, 8, 32>}, {transform_indices = @transform_2, window_bounds = array<i64: 1, 8, 32>}, {transform_indices = @transform_3, window_bounds = array<i64: 1, 64, 128>}, {transform_indices = @transform_4, window_bounds = array<i64: 1, 1, 128>}, {transform_indices = @transform_5, window_bounds = array<i64: 1, 32, 128>}, {transform_indices = @transform_6, window_bounds = array<i64: 1, 1, 128>}, {transform_indices = @transform_7, window_bounds = array<i64: 1, 8, 32>}, {transform_indices = @transform_8, window_bounds = array<i64: 1, 8, 32>}, {transform_indices = @transform_9, window_bounds = array<i64: 1, 1, 8, 128>}]} {
    %c0_i32 = arith.constant 0 : i32
    %0 = arith.cmpi eq, %arg1, %c0_i32 : i32
    %1 = arith.extui %0 : i1 to i32
    %c0_i32_0 = arith.constant 0 : i32
    %2 = arith.cmpi ne, %1, %c0_i32_0 : i32
    scf.if %2 {
      %c0_32 = arith.constant 0 : index
      %c0_33 = arith.constant 0 : index
      %c0_34 = arith.constant 0 : index
      %52 = vector.load %arg3[%c0_32, %c0_33, %c0_34] : memref<1x8x32xf32, #tpu.memory_space<vmem>>, vector<1x8x32xf32>
      %53 = vector.shape_cast %52 : vector<1x8x32xf32> to vector<8x32xf32>
      %c0_35 = arith.constant 0 : index
      %c32_36 = arith.constant 32 : index
      %54 = vector.load %arg12[%c0_35, %c32_36] : memref<8x64xf32, #tpu.memory_space<vmem>>, vector<8x32xf32>
      tpu.vector_store %arg12[%c0_35, %c32_36], %53 {strides = array<i32>} : memref<8x64xf32, #tpu.memory_space<vmem>>, vector<8x32xf32>,
      %c0_37 = arith.constant 0 : index
      %c0_38 = arith.constant 0 : index
      %c0_39 = arith.constant 0 : index
      %55 = vector.load %arg4[%c0_37, %c0_38, %c0_39] : memref<1x8x32xf32, #tpu.memory_space<vmem>>, vector<1x8x32xf32>
      %56 = vector.shape_cast %55 : vector<1x8x32xf32> to vector<8x32xf32>
      %c0_40 = arith.constant 0 : index
      %c0_41 = arith.constant 0 : index
      %57 = vector.load %arg13[%c0_40, %c0_41] : memref<8x32xf32, #tpu.memory_space<vmem>>, vector<8x32xf32>
      tpu.vector_store %arg13[%c0_40, %c0_41], %56 {strides = array<i32>} : memref<8x32xf32, #tpu.memory_space<vmem>>, vector<8x32xf32>,
    } else {
    }
    %c0 = arith.constant 0 : index
    %c0_1 = arith.constant 0 : index
    %c0_2 = arith.constant 0 : index
    %c0_3 = arith.constant 0 : index
    %3 = vector.load %arg2[%c0, %c0_1, %c0_2, %c0_3] : memref<1x1x8x32xf32, #tpu.memory_space<vmem>>, vector<1x1x8x32xf32>
    %4 = vector.shape_cast %3 : vector<1x1x8x32xf32> to vector<8x32xf32>
    %c0_4 = arith.constant 0 : index
    %c0_5 = arith.constant 0 : index
    %5 = vector.load %arg12[%c0_4, %c0_5] : memref<8x64xf32, #tpu.memory_space<vmem>>, vector<8x32xf32>
    tpu.vector_store %arg12[%c0_4, %c0_5], %4 {strides = array<i32>} : memref<8x64xf32, #tpu.memory_space<vmem>>, vector<8x32xf32>,
    %c0_6 = arith.constant 0 : index
    %c0_7 = arith.constant 0 : index
    %6 = vector.load %arg12[%c0_6, %c0_7] : memref<8x64xf32, #tpu.memory_space<vmem>>, vector<8x64xf32>
    %c0_8 = arith.constant 0 : index
    %c0_9 = arith.constant 0 : index
    %c0_10 = arith.constant 0 : index
    %7 = vector.load %arg5[%c0_8, %c0_9, %c0_10] : memref<1x64x128xf32, #tpu.memory_space<vmem>>, vector<1x64x128xf32>
    %8 = vector.shape_cast %7 : vector<1x64x128xf32> to vector<64x128xf32>
    %cst = arith.constant dense<0.000000e+00> : vector<8x128xf32>
    %9 = tpu.matmul %6, %8, %cst {dimension_numbers = #tpu.dot_dimension_numbers<[1], [0], [0], [1], [0, 0, 1, 1], [], []>} : vector<8x64xf32>, vector<64x128xf32>, vector<8x128xf32> -> vector<8x128xf32>
    %c0_11 = arith.constant 0 : index
    %c0_12 = arith.constant 0 : index
    %c0_13 = arith.constant 0 : index
    %10 = vector.load %arg6[%c0_11, %c0_12, %c0_13] : memref<1x1x128xf32, #tpu.memory_space<vmem>>, vector<1x1x128xf32>
    %11 = vector.shape_cast %10 : vector<1x1x128xf32> to vector<1x128xf32>
    %12 = vector.broadcast %11 : vector<1x128xf32> to vector<8x128xf32>
    %13 = arith.addf %9, %12 : vector<8x128xf32>
    %14 = tpu.iota {dimensions = array<i32: 1>} : vector<8x128xi32>
    %c64_i32 = arith.constant 64 : i32
    %15 = vector.broadcast %c64_i32 : i32 to vector<8x128xi32>
    %16 = arith.cmpi sge, %14, %15 : vector<8x128xi32>
    %c96_i32 = arith.constant 96 : i32
    %17 = vector.broadcast %c96_i32 : i32 to vector<8x128xi32>
    %18 = arith.cmpi slt, %14, %17 : vector<8x128xi32>
    %19 = arith.andi %16, %18 : vector<8x128xi1>
    %20 = math.tanh %13 : vector<8x128xf32>
    %21 = arith.negf %13 : vector<8x128xf32>
    %22 = math.exp %21 : vector<8x128xf32>
    %cst_14 = arith.constant 1.000000e+00 : f32
    %23 = vector.broadcast %cst_14 : f32 to vector<8x128xf32>
    %24 = arith.addf %23, %22 : vector<8x128xf32>
    %25 = arith.divf %23, %24 : vector<8x128xf32>
    %26 = arith.select %19, %20, %25 : vector<8x128xi1>, vector<8x128xf32>
    %27 = vector.extract_strided_slice %26 {offsets = [0, 0], sizes = [8, 32], strides = [1, 1]} : vector<8x128xf32> to vector<8x32xf32>
    %28 = vector.extract_strided_slice %26 {offsets = [0, 32], sizes = [8, 32], strides = [1, 1]} : vector<8x128xf32> to vector<8x32xf32>
    %29 = vector.extract_strided_slice %26 {offsets = [0, 64], sizes = [8, 32], strides = [1, 1]} : vector<8x128xf32> to vector<8x32xf32>
    %30 = vector.extract_strided_slice %26 {offsets = [0, 96], sizes = [8, 32], strides = [1, 1]} : vector<8x128xf32> to vector<8x32xf32>
    %c0_15 = arith.constant 0 : index
    %c0_16 = arith.constant 0 : index
    %31 = vector.load %arg13[%c0_15, %c0_16] : memref<8x32xf32, #tpu.memory_space<vmem>>, vector<8x32xf32>
    %32 = arith.mulf %28, %31 : vector<8x32xf32>
    %33 = arith.mulf %27, %29 : vector<8x32xf32>
    %34 = arith.addf %32, %33 : vector<8x32xf32>
    %35 = math.tanh %34 : vector<8x32xf32>
    %36 = arith.mulf %30, %35 : vector<8x32xf32>
    %c0_17 = arith.constant 0 : index
    %c32 = arith.constant 32 : index
    %37 = vector.load %arg12[%c0_17, %c32] : memref<8x64xf32, #tpu.memory_space<vmem>>, vector<8x32xf32>
    tpu.vector_store %arg12[%c0_17, %c32], %36 {strides = array<i32>} : memref<8x64xf32, #tpu.memory_space<vmem>>, vector<8x32xf32>,
    %c0_18 = arith.constant 0 : index
    %c0_19 = arith.constant 0 : index
    %38 = vector.load %arg13[%c0_18, %c0_19] : memref<8x32xf32, #tpu.memory_space<vmem>>, vector<8x32xf32>
    tpu.vector_store %arg13[%c0_18, %c0_19], %34 {strides = array<i32>} : memref<8x32xf32, #tpu.memory_space<vmem>>, vector<8x32xf32>,
    %c0_20 = arith.constant 0 : index
    %c0_21 = arith.constant 0 : index
    %c0_22 = arith.constant 0 : index
    %39 = vector.load %arg7[%c0_20, %c0_21, %c0_22] : memref<1x32x128xf32, #tpu.memory_space<vmem>>, vector<1x32x128xf32>
    %40 = vector.shape_cast %39 : vector<1x32x128xf32> to vector<32x128xf32>
    %cst_23 = arith.constant dense<0.000000e+00> : vector<8x128xf32>
    %41 = tpu.matmul %36, %40, %cst_23 {dimension_numbers = #tpu.dot_dimension_numbers<[1], [0], [0], [1], [0, 0, 1, 1], [], []>} : vector<8x32xf32>, vector<32x128xf32>, vector<8x128xf32> -> vector<8x128xf32>
    %c0_24 = arith.constant 0 : index
    %c0_25 = arith.constant 0 : index
    %c0_26 = arith.constant 0 : index
    %42 = vector.load %arg8[%c0_24, %c0_25, %c0_26] : memref<1x1x128xf32, #tpu.memory_space<vmem>>, vector<1x1x128xf32>
    %43 = vector.shape_cast %42 : vector<1x1x128xf32> to vector<1x128xf32>
    %44 = vector.broadcast %43 : vector<1x128xf32> to vector<8x128xf32>
    %45 = arith.addf %41, %44 : vector<8x128xf32>
    %c0_27 = arith.constant 0 : index
    %c0_28 = arith.constant 0 : index
    %c0_29 = arith.constant 0 : index
    %c0_30 = arith.constant 0 : index
    %46 = vector.load %arg11[%c0_27, %c0_28, %c0_29, %c0_30] : memref<1x1x8x128xf32, #tpu.memory_space<vmem>>, vector<1x1x8x128xf32>
    %47 = vector.shape_cast %46 : vector<1x1x8x128xf32> to vector<8x128xf32>
    %48 = vector.shape_cast %45 : vector<8x128xf32> to vector<1x1x8x128xf32>
    tpu.vector_store %arg11[%c0_27, %c0_28, %c0_29, %c0_30], %48 {strides = array<i32>} : memref<1x1x8x128xf32, #tpu.memory_space<vmem>>, vector<1x1x8x128xf32>,
    %c7_i32 = arith.constant 7 : i32
    %49 = arith.cmpi eq, %arg1, %c7_i32 : i32
    %50 = arith.extui %49 : i1 to i32
    %c0_i32_31 = arith.constant 0 : i32
    %51 = arith.cmpi ne, %50, %c0_i32_31 : i32
    scf.if %51 {
      %c0_32 = arith.constant 0 : index
      %c0_33 = arith.constant 0 : index
      %c0_34 = arith.constant 0 : index
      %52 = vector.load %arg9[%c0_32, %c0_33, %c0_34] : memref<1x8x32xf32, #tpu.memory_space<vmem>>, vector<1x8x32xf32>
      %53 = vector.shape_cast %52 : vector<1x8x32xf32> to vector<8x32xf32>
      %54 = vector.shape_cast %36 : vector<8x32xf32> to vector<1x8x32xf32>
      tpu.vector_store %arg9[%c0_32, %c0_33, %c0_34], %54 {strides = array<i32>} : memref<1x8x32xf32, #tpu.memory_space<vmem>>, vector<1x8x32xf32>,
      %c0_35 = arith.constant 0 : index
      %c0_36 = arith.constant 0 : index
      %c0_37 = arith.constant 0 : index
      %55 = vector.load %arg10[%c0_35, %c0_36, %c0_37] : memref<1x8x32xf32, #tpu.memory_space<vmem>>, vector<1x8x32xf32>
      %56 = vector.shape_cast %55 : vector<1x8x32xf32> to vector<8x32xf32>
      %57 = vector.shape_cast %34 : vector<8x32xf32> to vector<1x8x32xf32>
      tpu.vector_store %arg10[%c0_35, %c0_36, %c0_37], %57 {strides = array<i32>} : memref<1x8x32xf32, #tpu.memory_space<vmem>>, vector<1x8x32xf32>,
    } else {
    }
    return
  }
  func.func @transform_0(%arg0: i32, %arg1: i32) -> (i32, i32, i32, i32) {
    %c0_i32 = arith.constant 0 : i32
    %c0_i32_0 = arith.constant 0 : i32
    %c0_i32_1 = arith.constant 0 : i32
    return %arg0, %arg1, %c0_i32, %c0_i32_0 : i32, i32, i32, i32
  }
  func.func @transform_1(%arg0: i32, %arg1: i32) -> (i32, i32, i32) {
    %c0_i32 = arith.constant 0 : i32
    %c0_i32_0 = arith.constant 0 : i32
    %c0_i32_1 = arith.constant 0 : i32
    return %arg0, %c0_i32, %c0_i32_0 : i32, i32, i32
  }
  func.func @transform_2(%arg0: i32, %arg1: i32) -> (i32, i32, i32) {
    %c0_i32 = arith.constant 0 : i32
    %c0_i32_0 = arith.constant 0 : i32
    %c0_i32_1 = arith.constant 0 : i32
    return %arg0, %c0_i32, %c0_i32_0 : i32, i32, i32
  }
  func.func @transform_3(%arg0: i32, %arg1: i32) -> (i32, i32, i32) {
    %c0_i32 = arith.constant 0 : i32
    %c0_i32_0 = arith.constant 0 : i32
    %c0_i32_1 = arith.constant 0 : i32
    return %arg0, %c0_i32, %c0_i32_0 : i32, i32, i32
  }
  func.func @transform_4(%arg0: i32, %arg1: i32) -> (i32, i32, i32) {
    %c0_i32 = arith.constant 0 : i32
    %c0_i32_0 = arith.constant 0 : i32
    %c0_i32_1 = arith.constant 0 : i32
    return %arg0, %c0_i32, %c0_i32_0 : i32, i32, i32
  }
  func.func @transform_5(%arg0: i32, %arg1: i32) -> (i32, i32, i32) {
    %c0_i32 = arith.constant 0 : i32
    %c0_i32_0 = arith.constant 0 : i32
    %c0_i32_1 = arith.constant 0 : i32
    return %arg0, %c0_i32, %c0_i32_0 : i32, i32, i32
  }
  func.func @transform_6(%arg0: i32, %arg1: i32) -> (i32, i32, i32) {
    %c0_i32 = arith.constant 0 : i32
    %c0_i32_0 = arith.constant 0 : i32
    %c0_i32_1 = arith.constant 0 : i32
    return %arg0, %c0_i32, %c0_i32_0 : i32, i32, i32
  }
  func.func @transform_7(%arg0: i32, %arg1: i32) -> (i32, i32, i32) {
    %c0_i32 = arith.constant 0 : i32
    %c0_i32_0 = arith.constant 0 : i32
    %c0_i32_1 = arith.constant 0 : i32
    return %arg0, %c0_i32, %c0_i32_0 : i32, i32, i32
  }
  func.func @transform_8(%arg0: i32, %arg1: i32) -> (i32, i32, i32) {
    %c0_i32 = arith.constant 0 : i32
    %c0_i32_0 = arith.constant 0 : i32
    %c0_i32_1 = arith.constant 0 : i32
    return %arg0, %c0_i32, %c0_i32_0 : i32, i32, i32
  }
  func.func @transform_9(%arg0: i32, %arg1: i32) -> (i32, i32, i32, i32) {
    %c0_i32 = arith.constant 0 : i32
    %c0_i32_0 = arith.constant 0 : i32
    %c0_i32_1 = arith.constant 0 : i32
    return %arg0, %arg1, %c0_i32, %c0_i32_0 : i32, i32, i32, i32
  }
}

</mosaic_0001>

<bundles_post_ra>
// kernel: tpu_custom_call.1
= control target key start
LH: loop header
LB: loop body
LE: loop exit
PB: predicated region body
PF: predicated region fallthrough
CT: control target
= control target key end

     0   :  { %s2365_s0 = inlined_call_operand.hbm [shape: f32[3,8,8,32], index: 0, kind: input, shape index: {}]   ;;  %s2366_s1 = inlined_call_operand.hbm [shape: f32[3,8,32], index: 1, kind: input, shape index: {}]   ;;  %s2367_s2 = inlined_call_operand.hbm [shape: f32[3,8,32], index: 2, kind: input, shape index: {}]   ;;  %s2368_s3 = inlined_call_operand.hbm [shape: f32[3,64,128], index: 3, kind: input, shape index: {}]   ;;  %s2369_s4 = inlined_call_operand.vmem [shape: f32[3,1,128], index: 4, kind: input, shape index: {}]   ;;  %s2370_s5 = inlined_call_operand.hbm [shape: f32[3,32,128], index: 5, kind: input, shape index: {}]   ;;  %s2371_s6 = inlined_call_operand.vmem [shape: f32[3,1,128], index: 6, kind: input, shape index: {}]   ;;  %s2372_s7 = inlined_call_operand.hbm [shape: f32[3,8,32], index: 7, kind: output, shape index: {0}]   ;;  %s2373_s8 = inlined_call_operand.hbm [shape: f32[3,8,32], index: 8, kind: output, shape index: {1}]   ;;  %s2374_s9 = inlined_call_operand.hbm [shape: f32[3,8,8,128], index: 9, kind: output, shape index: {2}]  }
   0x1   :  { %2410 = sst [smem:[#allocation39_spill]] %s2366_s1 }
   0x2   :  { %2411 = sst [smem:[#allocation40_spill]] %s2368_s3 }
   0x3   :  { %2412 = sst [smem:[#allocation41_spill]] %s2369_s4 }
   0x4   :  { %2413 = sst [smem:[#allocation42_spill]] %s2371_s6 }
   0x5   :  { %2414 = sst [smem:[#allocation43_spill]] %s2372_s7 }
   0x6   :  { %2415 = sst [smem:[#allocation44_spill]] %s2373_s8 }
   0x7   :  { %2416 = sst [smem:[#allocation45_spill]] %s2374_s9 }
   0x8   :  { %15 = vsyncpa [#allocation5], 0 }
   0x9   :  { %17 = vsyncpa [#allocation5 + $0x1], 0 }
   0xa   :  { %18 = vsyncpa [#allocation8], 0 }
   0xb   :  { %20 = vsyncpa [#allocation8 + $0x1], 0 }
   0xc   :  { %21 = vsyncpa [#allocation11], 0 }
   0xd   :  { %23 = vsyncpa [#allocation11 + $0x1], 0 }
   0xe   :  { %24 = vsyncpa [#allocation6], 0 }
   0xf   :  { %26 = vsyncpa [#allocation6 + $0x1], 0 }
  0x10   :  { %27 = vsyncpa [#allocation15], 0 }
  0x11   :  { %29 = vsyncpa [#allocation15 + $0x1], 0  ;;  %s1776_s30 = smov 0   ;;  %s1778_s10 = smov 0  }
  0x12   :  { %s1780_s11 = smov 0   ;;  %s1782_s12 = smov 0  }
  0x13   :  { %s1784_s13 = smov 0   ;;  %s1786_s14 = smov 0  }
  0x14   :  { %s1788_s15 = smov 0   ;;  %s1790_s16 = smov 0  }
  0x15   :  { %s1792_s17 = smov 0   ;;  %s1794_s18 = smov 0  }
  0x16   :  { %s1796_s19 = smov 0  }
  0x17 LB: > { %2417 = sst [smem:[#allocation23_spill]] %s1667_s30  ;;  %p2381_p0 = scmp.eq.s32.totalorder %s1707_s19, 0  ;;  %s1707_s19 = sphi %s1796_s19, %s35_s19   ;;  %s1703_s18 = sphi %s1794_s18, %s2496_s18   ;;  %s1699_s17 = sphi %s1792_s17, %s2495_s17   ;;  %s1695_s16 = sphi %s1790_s16, %s2494_s16   ;;  %s1691_s15 = sphi %s1788_s15, %s2493_s15   ;;  %s1687_s14 = sphi %s1786_s14, %s2499_s14   ;;  %s1683_s13 = sphi %s1784_s13, %s2498_s13   ;;  %s1679_s12 = sphi %s1782_s12, %s2497_s12   ;;  %s1675_s11 = sphi %s1780_s11, %s2491_s11   ;;  %s1671_s10 = sphi %s1778_s10, %s2490_s10   ;;  %s1667_s30 = sphi %s1776_s30, %s2489_s30  }
  0x18   : > { %2418 = sst [smem:[#allocation24_spill]] %s1671_s10  ;;  %p2380_p1 = scmp.ne.s32.totalorder %s1675_s11, %s1671_s10 }
  0x19   : > { %2419 = sst [smem:[#allocation25_spill]] %s1675_s11  ;;  %p2379_p3 = scmp.lt.s32.totalorder %s1707_s19, 24 }
  0x1a   : > { %2420 = sst [smem:[#allocation26_spill]] %s1691_s15  ;;  %p91_p4 = por %p2380_p1, %p2381_p0 }
  0x1b   : > { %2421 = sst [smem:[#allocation27_spill]] %s1695_s16  ;;  %s1845_s22 = sand.u32 1, %s1675_s11  }
  0x1c   : > { %2422 = sst [smem:[#allocation28_spill]] %s1699_s17  ;;  %s2378_s23 = sshll.u32 %s1845_s22, 3 }
  0x1d   : > { %2423 = sst [smem:[#allocation29_spill]] %s1703_s18  ;;  %s1116_s24 = sshll.u32 %s1703_s18, 7 }
  0x1e   : > { %s2424_s1 = sld [smem:[#allocation39_spill]]  ;;  %s353_s28 = scalar_lea.vmem [#allocation7], %s2378_s23 }
  0x1f   : > { %s360_s29 = sshll.u32 %s353_s28, 4  ;;  %p1858_p5 = pnand %p2379_p3, %p91_p4  ;;  %s1862_s29 = int_to_ptr.vmem [resolvable:$true] %s360_s29 }
  0x20   : > { %s1867_s25 = scalar_lea.hbm %s2367_s2, %s1116_s24  ;;  %s2426_s26 = sand.u32 1, %s1707_s19  }
  0x21   : > { %s2425_s20 = scalar_select %p1858_p5, 1, 0 }
  0x22   : > { %s1871_s7 = scalar_lea.sflag [#allocation8], %s2426_s26  ;;  %p1877_p7 = pneg %p1858_p5 }
  0x24   : > { %s1852_s27 = scalar_lea.hbm %s2424_s1, %s1116_s24  ;;  %s1368_s9 = scalar_lea.hbm %s2424_s1, 384 }
  0x25   : > { %s1363_s8 = scalar_lea.hbm %s1852_s27, 128  ;;  %p1369_p10 = scmp.lt.u32.totalorder %s1852_s27, %s2424_s1 }
  0x26   : > { %p1364_p6 = scmp.ne.s32.totalorder %s1852_s27, %s1363_s8  ;;  %p1370_p11 = scmp.lt.u32.totalorder %s1368_s9, %s1363_s8 }
  0x27   : > { %p1372_p13 = scmp.lt.u32.totalorder %s1363_s8, %s1852_s27 }
  0x28   : > { %p1366_p8 = pnand %p1877_p7, %p1364_p6  ;;  %p1371_p12 = por %p1370_p11, %p1369_p10 }
  0x2a   : > { %p1367_p9 = pneg %p1366_p8  ;;  %p1373_p4 = por %p1372_p13, %p1371_p12 }
  0x2c   : > { %p1374_p3 = pnand %p1373_p4, %p1367_p9 }
  0x2e   : > { %1377 = shalt.err (!%p1374_p3)
}
  0x2f   : > { %s1378_s26 = scalar_lea.vmem %s1862_s29, 128  ;;  %s1709_s15 = smov [#allocation7]  }
  0x30   : > { %p1379_p6 = scmp.ne.s32.totalorder %s1862_s29, %s1378_s26  ;;  %s1383_s23 = sshll.u32 %s1709_s15, 4  ;;  %s1384_s23 = int_to_ptr.vmem [resolvable:$false] %s1383_s23 }
  0x31   : > { %s1385_s21 = scalar_lea.vmem %s1384_s23, 256  ;;  %p1386_p2 = scmp.lt.s32.totalorder %s1862_s29, %s1384_s23 }
  0x32   : > { %p1381_p8 = pnand %p1379_p6, %p1877_p7  ;;  %p1387_p0 = scmp.lt.s32.totalorder %s1385_s21, %s1378_s26 }
  0x34   : > { %p1382_p1 = pneg %p1381_p8  ;;  %p1388_p10 = por %p1387_p0, %p1386_p2 }
  0x36   : > { %p1389_p11 = pnand %p1388_p10, %p1382_p1 }
  0x38   : > { %1392 = shalt.err (!%p1389_p11)
}
  0x39   : > { %1236 = dma.hbm_to_vmem [thread:$0]  (!%p1858_p5), %s1852_s27, 128, %s1862_s29, %s1871_s7  }
  0x3a   : > { %s1122_s8 = sshll.u32 %s1845_s22, 5  ;;  %p1125_p3 = scmp.ge.s32.totalorder %s1707_s19, 1 }
  0x3b   : > { %s416_s9 = scalar_lea.vmem [#allocation12], %s1122_s8  ;;  %p437_p0 = scmp.lt.s32.totalorder %s1707_s19, 25 }
  0x3c   : > { %s423_s24 = sshll.u32 %s416_s9, 4  ;;  %s1119_s26 = sshll.u32 %s1845_s22, 6  ;;  %s1904_s24 = int_to_ptr.vmem [resolvable:$true] %s423_s24 }
  0x3d   : > { %p1907_p1 = pnand %p1125_p3, %p437_p0  ;;  %s1150_s23 = sshll.u32 %s1703_s18, 10 }
  0x3e   : > { %s389_s21 = scalar_lea.vmem [#allocation10], %s1119_s26  ;;  %s2430_s3 = sld [smem:[#allocation40_spill]] }
  0x3f   : > { %s2428_s15 = scalar_select %p1907_p1, 1, 0 }
  0x40   : > { %s396_s1 = sshll.u32 %s389_s21, 4  ;;  %s2431_s29 = sand.u32 1, %s1707_s19   ;;  %s1917_s1 = int_to_ptr.vmem [resolvable:$true] %s396_s1 }
  0x41   : > { %2429 = sst [smem:[#allocation30_spill]] %s2428_s15  ;;  %s1921_s8 = scalar_lea.sflag [#allocation11], %s2431_s29 }
  0x44   : > { %s1915_s27 = scalar_lea.hbm %s2430_s3, %s1150_s23  ;;  %s1398_s4 = scalar_lea.hbm %s2430_s3, 3072 }
  0x45   : > { %s1393_s9 = scalar_lea.hbm %s1915_s27, 1024  ;;  %p1399_p13 = scmp.lt.u32.totalorder %s1915_s27, %s2430_s3 }
  0x46   : > { %p1394_p2 = scmp.ne.s32.totalorder %s1915_s27, %s1393_s9  ;;  %p1400_p4 = scmp.lt.u32.totalorder %s1398_s4, %s1393_s9 }
  0x47   : > { %p1402_p8 = scmp.lt.u32.totalorder %s1393_s9, %s1915_s27 }
  0x48   : > { %p1396_p9 = pnand %p1394_p2, %p1877_p7  ;;  %p1401_p6 = por %p1400_p4, %p1399_p13 }
  0x4a   : > { %p1397_p12 = pneg %p1396_p9  ;;  %p1403_p10 = por %p1402_p8, %p1401_p6 }
  0x4c   : > { %p1404_p11 = pnand %p1403_p10, %p1397_p12 }
  0x4e   : > { %1407 = shalt.err (!%p1404_p11)
}
  0x4f   : > { %s1408_s29 = scalar_lea.vmem %s1917_s1, 1024  ;;  %s1710_s26 = smov [#allocation10]  }
  0x50   : > { %p1409_p3 = scmp.ne.s32.totalorder %s1917_s1, %s1408_s29  ;;  %s1413_s21 = sshll.u32 %s1710_s26, 4  ;;  %s1414_s21 = int_to_ptr.vmem [resolvable:$false] %s1413_s21 }
  0x51   : > { %s1415_s6 = scalar_lea.vmem %s1414_s21, 2048  ;;  %p1416_p9 = scmp.lt.s32.totalorder %s1917_s1, %s1414_s21 }
  0x52   : > { %p1411_p0 = pnand %p1409_p3, %p1877_p7  ;;  %p1417_p1 = scmp.lt.s32.totalorder %s1415_s6, %s1408_s29 }
  0x54   : > { %p1412_p2 = pneg %p1411_p0  ;;  %p1418_p13 = por %p1417_p1, %p1416_p9 }
  0x56   : > { %p1419_p4 = pnand %p1418_p13, %p1412_p2 }
  0x58   : > { %1422 = shalt.err (!%p1419_p4)
}
  0x59   : > { %s2382_s9 = smov 128   ;;  %s2383_s4 = smov 8  }
  0x5a   : > { %1242 = dma.hbm_to_vmem [thread:$0]  (!%p1858_p5), %s1915_s27, 1024, %s1917_s1, %s1921_s8, %s2382_s9, %s2382_s9, %s2383_s4  }
  0x5b   : > { %s1949_s23 = sadd.s32 4294967295, %s1707_s19   ;;  %s2384_s29 = sadd.s32 4294967294, %s1707_s19  }
  0x5c   : > { %s44_s26 = sadd.s32 1, %s1699_s17  ;;  %s47_s21 = sadd.s32 1, %s1703_s18 }
  0x5d   : > { %p45_p1 = scmp.ge.s32.totalorder %s44_s26, 8  ;;  %s56_s6 = sadd.s32 1, %s1687_s14 }
  0x5e   : > { %p2389_p12 = scmp.ne.s32.totalorder %s1687_s14, %s1683_s13  ;;  %p2388_p6 = scmp.ne.s32.totalorder %s1683_s13, %s1679_s12 }
  0x5f   : > { %s2501_s26 = smov (%p45_p1, %s44_s26), 0  ;;  %s2503_s21 = smov (!%p45_p1, %s47_s21), %s1703_s18 }
  0x60   : > { %2432 = sst [smem:[#allocation31_spill]] %s2501_s26  ;;  %s52_s1 = ssub.s32 %s1699_s17, %s2501_s26 }
  0x61   : > { %p2433_p8 = scmp.eq.s32.totalorder %s1707_s19, 0  ;;  %p49_p11 = scmp.ge.s32.totalorder %s2503_s21, 3 }
  0x62   : > { %p70_p3 = scmp.eq.s32.totalorder %s1949_s23, 0  ;;  %p249_p0 = scmp.eq.s32.totalorder %s1949_s23, 23 }
  0x63   : > { %p1969_p10 = por %p2433_p8, %p2389_p12  ;;  %p1977_p2 = scmp.eq.s32.totalorder %s2384_s29, 23 }
  0x64   : > { %s2505_s21 = smov (%p49_p11, %s2503_s21), 0  ;;  %p1986_p9 = por %p70_p3, %p2388_p6 }
  0x65   : > { %2436 = sst [smem:[#allocation32_spill]] %s2505_s21  ;;  %p2439_p13 = scmp.ne.s32.totalorder %s1671_s10, %s1667_s30 }
  0x66   : > { %s2437_s4 = scalar_select %p1986_p9, 1, 0 }
  0x67   : > { %p1993_p4 = por %p2439_p13, %p70_p3  ;;  %s51_s29 = ssub.s32 %s1703_s18, %s2505_s21 }
  0x68   : > { %2438 = sst [smem:[#allocation33_spill]] %s2437_s4  ;;  %p2442_p1 = scmp.ne.s32.totalorder %s1675_s11, %s1671_s10 }
  0x69   : > { %s2440_s3 = scalar_select %p1993_p4, 1, 0 }
  0x6a   : > { %p2004_p8 = por %p249_p0, %p2442_p1  ;;  %s53_s16 = sor.u32 %s52_s1, %s51_s29 }
  0x6b   : > { %2441 = sst [smem:[#allocation34_spill]] %s2440_s3  ;;  %p80_p11 = scmp.eq.s32.totalorder %s51_s29, 0 }
  0x6c   : > { %s2443_s26 = scalar_select %p2004_p8, 1, 0 }
  0x6d   : > { %p54_p6 = scmp.eq.s32.totalorder %s53_s16, 0  ;;  %p2445_p12 = pmov %p2439_p13 }
  0x6e   : > { %2444 = sst [smem:[#allocation35_spill]] %s2443_s26  ;;  %s2448_s3 = sadd.s32 1, %s1675_s11 }
  0x6f   : > { %p2013_p9 = por %p1977_p2, %p2445_p12  ;;  %p2451_p3 = scmp.ne.s32.totalorder %s1687_s14, %s1683_s13 }
  0x70   : > { %s2020_s21 = scalar_select %p80_p11, %s1675_s11, %s2448_s3  }
  0x71   : > { %s2446_s4 = scalar_select %p2013_p9, 1, 0 }
  0x72   : > { %2449 = sst [smem:[#allocation37_spill]] %s2020_s21  ;;  %p2030_p13 = por %p249_p0, %p2451_p3 }
  0x73   : > { %2447 = sst [smem:[#allocation36_spill]] %s2446_s4  ;;  %p2453_p1 = scmp.ne.s32.totalorder %s1683_s13, %s1679_s12 }
  0x74   : > { %s2023_s15 = scalar_select %p54_p6, %s1687_s14, %s56_s6  }
  0x75   : > { %s2452_s29 = scalar_select %p2030_p13, 1, 0 }
  0x76   : > { %2450 = sst [smem:[#allocation38_spill]] %s2023_s15  ;;  %p2039_p8 = por %p1977_p2, %p2453_p1 }
  0x77   : > { %s329_s1 = sand.u32 1, %s1687_s14   ;;  %s1113_s4 = sshll.u32 %s1703_s18, 3 }
  0x78   : > { %s2454_s16 = scalar_select %p2039_p8, 1, 0 }
  0x79   : > { %s1112_s30 = sshll.u32 %s329_s1, 3  ;;  %s338_s3 = sadd.s32 %s1699_s17, %s1113_s4 }
  0x7a   : > { %s1114_s21 = sshll.u32 %s338_s3, 7  ;;  %s333_s6 = scalar_lea.vmem [#allocation4], %s1112_s30 }
  0x7b   : > { %s342_s15 = sshll.u32 %s333_s6, 4  ;;  %s2049_s10 = scalar_lea.hbm %s2365_s0, %s1114_s21  ;;  %s2051_s15 = int_to_ptr.vmem [resolvable:$true] %s342_s15 }
  0x7c   : > { %p2455_p12 = scmp.lt.s32.totalorder %s1707_s19, 24  ;;  %s2457_s9 = sshll.u32 %s1845_s22, 3 }
  0x7d   : > { %s371_s30 = scalar_lea.vmem [#allocation9], %s2457_s9  ;;  %s1151_s11 = sshll.u32 %s1703_s18, 9 }
  0x7e   : > { %p2057_p6 = pnand %p2455_p12, %p1969_p10  ;;  %s378_s4 = sshll.u32 %s371_s30, 4  ;;  %s2063_s4 = int_to_ptr.vmem [resolvable:$true] %s378_s4 }
  0x7f   : > { %s2069_s3 = scalar_lea.hbm %s2370_s5, %s1151_s11  ;;  %s330_s27 = scalar_lea.sflag [#allocation5], %s329_s1 }
  0x80   : > { %s1423_s6 = scalar_lea.hbm %s2049_s10, 128  ;;  %p1425_p0 = pneg %p2057_p6 }
  0x81   : > { %p1424_p10 = scmp.ne.s32.totalorder %s2049_s10, %s1423_s6  ;;  %s1428_s30 = scalar_lea.hbm %s2365_s0, 3072 }
  0x82   : > { %p1429_p3 = scmp.lt.u32.totalorder %s2049_s10, %s2365_s0  ;;  %p1430_p1 = scmp.lt.u32.totalorder %s1428_s30, %s1423_s6 }
  0x83   : > { %p1426_p2 = pnand %p1425_p0, %p1424_p10  ;;  %p1432_p8 = scmp.lt.u32.totalorder %s1423_s6, %s2049_s10 }
  0x84   : > { %p1431_p12 = por %p1430_p1, %p1429_p3 }
  0x85   : > { %p1427_p11 = pneg %p1426_p2 }
  0x86   : > { %p1433_p9 = por %p1432_p8, %p1431_p12 }
  0x88   : > { %p1434_p13 = pnand %p1433_p9, %p1427_p11 }
  0x8a   : > { %1437 = shalt.err (!%p1434_p13)
}
  0x8b   : > { %s1438_s1 = scalar_lea.vmem %s2051_s15, 128  ;;  %s1713_s11 = smov [#allocation4]  }
  0x8c   : > { %p1439_p10 = scmp.ne.s32.totalorder %s2051_s15, %s1438_s1  ;;  %s1443_s26 = sshll.u32 %s1713_s11, 4  ;;  %s1444_s26 = int_to_ptr.vmem [resolvable:$false] %s1443_s26 }
  0x8d   : > { %s1445_s17 = scalar_lea.vmem %s1444_s26, 256  ;;  %p1446_p5 = scmp.lt.s32.totalorder %s2051_s15, %s1444_s26 }
  0x8e   : > { %p1441_p2 = pnand %p1439_p10, %p1425_p0  ;;  %p1447_p3 = scmp.lt.s32.totalorder %s1445_s17, %s1438_s1 }
  0x90   : > { %p1442_p4 = pneg %p1441_p2  ;;  %p1448_p1 = por %p1447_p3, %p1446_p5 }
  0x92   : > { %p1449_p8 = pnand %p1448_p1, %p1442_p4 }
  0x94   : > { %1452 = shalt.err (!%p1449_p8)
}
  0x95   : > { %1233 = dma.hbm_to_vmem [thread:$0]  (!%p2057_p6), %s2049_s10, 128, %s2051_s15, %s330_s27  }
  0x96   : > { %s1453_s18 = scalar_lea.hbm %s1867_s25, 128  ;;  %s1458_s22 = scalar_lea.hbm %s2367_s2, 384 }
  0x97   : > { %p1454_p9 = scmp.ne.s32.totalorder %s1867_s25, %s1453_s18  ;;  %p1459_p5 = scmp.lt.u32.totalorder %s1867_s25, %s2367_s2 }
  0x98   : > { %p1460_p4 = scmp.lt.u32.totalorder %s1458_s22, %s1453_s18  ;;  %p1462_p12 = scmp.lt.u32.totalorder %s1453_s18, %s1867_s25 }
  0x99   : > { %p1456_p13 = pnand %p1454_p9, %p1877_p7 }
  0x9a   : > { %p1461_p11 = por %p1460_p4, %p1459_p5 }
  0x9b   : > { %p1457_p0 = pneg %p1456_p13 }
  0x9c   : > { %p1463_p10 = por %p1462_p12, %p1461_p11 }
  0x9e   : > { %p1464_p2 = pnand %p1463_p10, %p1457_p0 }
  0xa0   : > { %1467 = shalt.err (!%p1464_p2)
}
  0xa1   : > { %s1468_s10 = scalar_lea.vmem %s2063_s4, 128  ;;  %s1714_s15 = smov [#allocation9]  }
  0xa2   : > { %p1469_p6 = scmp.ne.s32.totalorder %s2063_s4, %s1468_s10  ;;  %s1473_s12 = sshll.u32 %s1714_s15, 4  ;;  %s1474_s12 = int_to_ptr.vmem [resolvable:$false] %s1473_s12 }
  0xa3   : > { %s1475_s27 = scalar_lea.vmem %s1474_s12, 256  ;;  %p1476_p8 = scmp.lt.s32.totalorder %s2063_s4, %s1474_s12 }
  0xa4   : > { %p1471_p3 = pnand %p1469_p6, %p1877_p7  ;;  %p1477_p9 = scmp.lt.s32.totalorder %s1475_s27, %s1468_s10 }
  0xa6   : > { %p1472_p1 = pneg %p1471_p3  ;;  %p1478_p13 = por %p1477_p9, %p1476_p8 }
  0xa8   : > { %p1479_p5 = pnand %p1478_p13, %p1472_p1 }
  0xaa   : > { %1482 = shalt.err (!%p1479_p5)
}
  0xab   : > { %p2458_p0 = scmp.ne.s32.totalorder %s2425_s20, 0  ;;  %s1483_s1 = scalar_lea.hbm %s2069_s3, 512 }
  0xac   : > { %p1484_p4 = scmp.ne.s32.totalorder %s2069_s3, %s1483_s1  ;;  %s1488_s17 = scalar_lea.hbm %s2370_s5, 1536 }
  0xad   : > { %1239 = dma.hbm_to_vmem [thread:$0]  (!%p2458_p0), %s1867_s25, 128, %s2063_s4, %s1871_s7  }
  0xae   : > { %p1486_p11 = pnand %p1484_p4, %p1877_p7  ;;  %p1489_p10 = scmp.lt.u32.totalorder %s2069_s3, %s2370_s5 }
  0xaf   : > { %p1490_p2 = scmp.lt.u32.totalorder %s1488_s17, %s1483_s1  ;;  %p1492_p3 = scmp.lt.u32.totalorder %s1483_s1, %s2069_s3 }
  0xb0   : > { %p1487_p12 = pneg %p1486_p11 }
  0xb1   : > { %p1491_p6 = por %p1490_p2, %p1489_p10 }
  0xb3   : > { %p1493_p1 = por %p1492_p3, %p1491_p6 }
  0xb5   : > { %p1494_p8 = pnand %p1493_p1, %p1487_p12 }
  0xb7   : > { %1497 = shalt.err (!%p1494_p8)
}
  0xb8   : > { %s1498_s7 = scalar_lea.vmem %s1904_s24, 512  ;;  %s1715_s25 = smov [#allocation12]  }
  0xb9   : > { %p1499_p9 = scmp.ne.s32.totalorder %s1904_s24, %s1498_s7  ;;  %s1503_s4 = sshll.u32 %s1715_s25, 4  ;;  %s1504_s4 = int_to_ptr.vmem [resolvable:$false] %s1503_s4 }
  0xba   : > { %s1505_s6 = scalar_lea.vmem %s1504_s4, 1024  ;;  %p1506_p4 = scmp.lt.s32.totalorder %s1904_s24, %s1504_s4 }
  0xbb   : > { %p1501_p13 = pnand %p1499_p9, %p1877_p7  ;;  %p1507_p11 = scmp.lt.s32.totalorder %s1505_s6, %s1498_s7 }
  0xbd   : > { %p1502_p5 = pneg %p1501_p13  ;;  %p1508_p10 = por %p1507_p11, %p1506_p4 }
  0xbf   : > { %p1509_p2 = pnand %p1508_p10, %p1502_p5 }
  0xc1   : > { %1512 = shalt.err (!%p1509_p2)
}
  0xc2   : > { %s2459_s22 = smov 8   ;;  %s2460_s9 = smov 128  }
  0xc3   : > { %1245 = dma.hbm_to_vmem [thread:$0]  (!%p2458_p0), %s2069_s3, 512, %s1904_s24, %s1921_s8, %s2460_s9, %s2460_s9, %s2459_s22  }
  0xc4   : > { %s2461_s28 = sld [smem:[#allocation30_spill]] }
  0xca   : > { %p2462_p7 = scmp.ne.s32.totalorder %s2461_s28, 0 }
  0xcb   : > { %s2463_s30 = sld [smem:[#allocation33_spill]] (!%p2462_p7)  ;;  %s443_s10 = sand.u32 (!%p2462_p7), 1, %s1683_s13  }
  0xcc   : > { %441 = sbr.rel (%p2462_p7) target bundleno = 1382 (0x566), region = 48  ;;  %s2146_s15 = sshll.u32 (!%p2462_p7), %s443_s10, 3 }
  0xcd   : > { %s444_s12 = scalar_lea.sflag (!%p2462_p7), [#allocation5], %s443_s10 }
  0xd1   : > { %p2464_p12 = scmp.ne.s32.totalorder (!%p2462_p7), %s2463_s30, 0 }
  0xd3   : > { %1642 = dma.done.wait (%p2464_p12), %s444_s12, 128  }
  0xd4   : > { %1644 = vsyncadd (%p2464_p12), %s444_s12, 4294967168  ;;  %s2465_s20 = sld [smem:[#allocation24_spill]]  ;;  %s2466_s1 = sld [smem:[#allocation34_spill]] }
  0xd5   : > { %s2154_s24 = sand.u32 1, %s1949_s23  }
  0xd6   : > { %s453_s11 = scalar_lea.sflag [#allocation8], %s2154_s24 }
  0xda   : > { %s2157_s8 = sand.u32 1, %s2465_s20   ;;  %p2467_p0 = scmp.ne.s32.totalorder %s2466_s1, 0 }
  0xdb   : > { %s2160_s3 = sshll.u32 %s2157_s8, 3 }
  0xdc   : > { %s456_s26 = scalar_lea.vmem [#allocation7], %s2160_s3 }
  0xdd   : > { %1646 = dma.done.wait (%p2467_p0), %s453_s11, 256  }
  0xde   : > { %1648 = vsyncadd (%p2467_p0), %s453_s11, 4294967040  ;;  %s1129_s23 = sshll.u32 %s2157_s8, 6  ;;  %s465_s17 = scalar_lea.vmem [#allocation9], %s2160_s3 }
  0xdf   : > { %s471_s18 = scalar_lea.sflag [#allocation11], %s2154_s24  ;;  %s2171_s21 = scalar_lea.vmem [#allocation10], %s1129_s23 }
  0xe0   : > { %1650 = dma.done.wait (%p2467_p0), %s471_s18, 1536  }
  0xe1   : > { %1652 = vsyncadd (%p2467_p0), %s471_s18, 4294965760  ;;  %s2468_s7 = sld [smem:[#allocation27_spill]]  ;;  %s1130_s25 = sshll.u32 %s2157_s8, 5 }
  0xe2   : > { %s2469_s22 = sld [smem:[#allocation41_spill]]  ;;  %s2470_s10 = sld [smem:[#allocation42_spill]] }
  0xe3   : > { %s2190_s20 = scalar_lea.vmem [#allocation12], %s1130_s25  ;;  %s539_s1 = scalar_lea.vmem [#allocation13], %s2160_s3 }
  0xe4   : > { %s546_s11 = scalar_lea.vmem [#allocation14], %s2160_s3  ;;  %s553_s23 = scalar_lea.vmem [#allocation16], %s2146_s15 }
  0xe5   : > { %s2471_s18 = sld [smem:[#allocation26_spill]] }
  0xe7   : > { %p554_p6 = scmp.lt.s32.totalorder %s2468_s7, 2 }
  0xe9   : > { %s2507_s7 = smov (!%p554_p6, %s2468_s7), 2 }
  0xea   : > { %s556_s9 = scalar_lea.vmem %s2469_s22, %s2507_s7  ;;  %s559_s12 = scalar_lea.vmem %s2470_s10, %s2507_s7 }
  0xeb   : > { %p1134_p3 = scmp.ne.s32.totalorder %s2471_s18, 0 }
  0xec   : > { %v564_v0 = vld [vmem:[%s456_s26] sm:$0xff] (!%p1134_p3)  ;;  %v571_v1 = vld [vmem:[%s465_s17] sm:$0xff] (!%p1134_p3)  ;;  %vm572_vm0 = vcmask (!%p1134_p3), 261120   ;;  %s1716_s27 = smov (!%p1134_p3), 32   ;;  %vm569_vm1 = vcmask (!%p1134_p3), 523520  }
  0xed   : > { %563 = sbr.rel (%p1134_p3) target bundleno = 353 (0x161), region = 72  ;;  %566 = vrot.lane.b32.xlu0 (!%p1134_p3), %v564_v0, %s1716_s27  ;;  %573 = vst.msk [vmem:[#allocation3] sm:$0xff] (!%p1134_p3), %vm572_vm0, %v571_v1 }
 0x15f   : > { %v567_v2 = vpop.permute.xlu0 %566 }
 0x160   : > { %570 = vst.msk [vmem:[#allocation2] sm:$0xff] %vm569_vm1, %v567_v2 }
 0x161 PF: > { %v578_v3 = vld [vmem:[%s2171_s21] sm:$0xff]  ;;  %v579_v4 = vld [vmem:[%s2171_s21 + $0x8] sm:$0xff]  ;;  %v580_v5 = vld [vmem:[%s2171_s21 + $0x10] sm:$0xff]  ;;  %v1717_v6 = vmov 0.0|0.0   ;;  %vm1718_vm2 = vmmov 0   ;;  %v1719_v9 = vmov 0.0   ;;  %v667_v25 = vlaneseq }
 0x162   : > { %1196 = vmatprep.subr.bf16.mxu0 %v1717_v6  ;;  %v1197_v7 = vpack.c.bf16 %v579_v4, %v578_v3  ;;  %v581_v8 = vld [vmem:[%s2171_s21 + $0x18] sm:$0xff]  ;;  %1182 = vmatprep.mubr.msk.f32.mxu0 %vm1718_vm2, %v1719_v9  ;;  %vm575_vm3 = vcmask 261120   ;;  %s2472_s27 = scalar_lea.vmem [#allocation4], %s2146_s15  ;;  %v582_v12 = vld [vmem:[%s2171_s21 + $0x20] sm:$0xff]  ;;  %v583_v13 = vld [vmem:[%s2171_s21 + $0x28] sm:$0xff]  ;;  %vm593_vm4 = vcmask 523264  }
 0x163   : > { %v574_v10 = vld [vmem:[%s2472_s27] sm:$0xff]  ;;  %1208 = vmatprep.subr.bf16.mxu1 %v1717_v6  ;;  %1193 = vmatprep.mubr.msk.f32.mxu1 %vm1718_vm2, %v1719_v9  ;;  %v1200_v11 = vpack.c.bf16 %v581_v8, %v580_v5  ;;  %v1203_v14 = vpack.c.bf16 %v583_v13, %v582_v12  ;;  %v1135_v19 = vld [vmem:[%s556_s9] ss:$0 sm:$0xff]  ;;  %v668_v27 = vand.u32 127, %v667_v25  ;;  %v680_v31 = vld [vmem:[#allocation3] sm:$0xff]  ;;  %s1721_s4 = smov 32  }
 0x164   : > { %1198 = vmatpush3.bf16.msra.mxu0 %v1197_v7  ;;  %576 = vst.msk [vmem:[#allocation2] sm:$0xff] %vm575_vm3, %v574_v10  ;;  %v584_v15 = vld [vmem:[%s2171_s21 + $0x30] sm:$0xff]  ;;  %v585_v16 = vld [vmem:[%s2171_s21 + $0x38] sm:$0xff]  ;;  %s1720_s21 = smov 64   ;;  %v713_v38 = vld [vmem:[%s2190_s20] sm:$0xff]  ;;  %s1722_s6 = smov 96  }
 0x165   : > { %1199 = vmatprep.subr.bf16.mxu0 %v1717_v6  ;;  %v1206_v17 = vpack.c.bf16 %v585_v16, %v584_v15  ;;  %vm669_vm5 = vcmp.ge.s32.totalorder %v668_v27, 64  ;;  %vm670_vm6 = vcmp.lt.s32.totalorder %v668_v27, 96  ;;  %v714_v39 = vld [vmem:[%s2190_s20 + $0x8] sm:$0xff]  ;;  %v715_v40 = vld [vmem:[%s2190_s20 + $0x10] sm:$0xff]  ;;  %v716_v42 = vld [vmem:[%s2190_s20 + $0x18] sm:$0xff]  ;;  %vm706_vm8 = vcmask 523520  }
 0x166   : > { %vm671_vm7 = vmand %vm669_vm5, %vm670_vm6  ;;  %v1209_v41 = vpack.c.bf16 %v714_v39, %v713_v38  ;;  %v1212_v43 = vpack.c.bf16 %v716_v42, %v715_v40  ;;  %v1138_v50 = vld [vmem:[%s559_s12] ss:$0 sm:$0xff]  ;;  %s2475_s30 = sld [smem:[#allocation26_spill]] }
 0x168   : > { %1201 = vmatpush3.bf16.msra.mxu0 %v1200_v11  ;;  %1210 = vmatpush3.bf16.msra.mxu1 %v1209_v41 }
 0x169   : > { %1202 = vmatprep.subr.bf16.mxu0 %v1717_v6  ;;  %1211 = vmatprep.subr.bf16.mxu1 %v1717_v6 }
 0x16b   : > { %v577_v18 = vld [vmem:[#allocation2] sm:$0xff] }
 0x16c   : > { %1204 = vmatpush3.bf16.msra.mxu0 %v1203_v14  ;;  %1213 = vmatpush3.bf16.msra.mxu1 %v1212_v43  ;;  %p1140_p1 = scmp.ne.s32.totalorder %s2475_s30, 7 }
 0x16d   : > { %1205 = vmatprep.subr.bf16.mxu0 %v1717_v6 }
 0x170   : > { %1207 = vmatpush3.bf16.msra.mxu0 %v1206_v17 }
 0x173   : > { %1183 = vmatmul.mubr.msk.f32.vlgmr.msra.gmra.mrb[0].mxu0 %vm593_vm4, %v577_v18 }
 0x246   : > { %v663_v20 = vpop.f32.mrb[0].mxu0 }
 0x247   : > { %v664_v21 = vadd.f32 %v1135_v19, %v663_v20  ;;  %v1184_v22 = vpop.f32.mrb[1].mxu0 }
 0x249   : > { %v1137_v23 = vmul.f32 -1.442695, %v664_v21 }
 0x24b   : > { %1355 = vpow2.f32 %v1137_v23 }
 0x24c   : > { %1357 = vtanh.f32 %v664_v21 }
 0x255   : > { %v1356_v24 = vpop.eup %1355 }
 0x256   : > { %v676_v26 = vadd.f32 1.0, %v1356_v24  ;;  %v1358_v28 = vpop.eup %1357 }
 0x258   : > { %1359 = vrcp.f32 %v676_v26 }
 0x262   : > { %v1360_v29 = vpop.eup %1359 }
 0x263   : > { %v679_v30 = vsel %vm671_vm7, %v1358_v28, %v1360_v29 }
 0x264   : > { %687 = vrot.lane.b32.xlu0 %v679_v30, %s1720_s21 }
 0x268   : > { %682 = vrot.lane.b32.xlu0 %v680_v31, %s1721_s4 }
 0x2d6   : > { %v688_v32 = vpop.permute.xlu0 %687 }
 0x2d7   : > { %v690_v33 = vmul.f32 %v688_v32, %v679_v30 }
 0x2d9   : > { %692 = vrot.lane.b32.xlu1 %v690_v33, %s1721_s4 }
 0x2da   : > { %v683_v34 = vpop.permute.xlu0 %682 }
 0x2db   : > { %v685_v35 = vmul.f32 %v683_v34, %v679_v30 }
 0x34b   : > { %v693_v36 = vpop.permute.xlu1 %692 }
 0x34c   : > { %v695_v37 = vadd.f32 %v693_v36, %v685_v35 }
 0x34e   : > { %1361 = vtanh.f32 %v695_v37 }
 0x358   : > { %v1362_v44 = vpop.eup %1361 }
 0x359   : > { %698 = vrot.lane.b32.xlu1 %v1362_v44, %s1720_s21 }
 0x3cb   : > { %v699_v45 = vpop.permute.xlu1 %698 }
 0x3cc   : > { %v701_v46 = vmul.f32 %v699_v45, %v679_v30 }
 0x3ce   : > { %703 = vrot.lane.b32.xlu1 %v701_v46, %s1720_s21  ;;  %724 = vrot.lane.b32.xlu0 %v701_v46, %s1721_s4 }
 0x3d2   : > { %709 = vrot.lane.b32.xlu0 %v695_v37, %s1722_s6 }
 0x440   : > { %v704_v47 = vpop.permute.xlu1 %703  ;;  %v725_v48 = vpop.permute.xlu0 %724 }
 0x441   : > { %707 = vst.msk [vmem:[#allocation2] sm:$0xff] %vm706_vm8, %v704_v47  ;;  %1194 = vmatmul.mubr.msk.f32.vlgmr.msra.gmra.mrb[0].mxu1 %vm575_vm3, %v725_v48 }
 0x442   : > { %804 = vst.msk [vmem:[%s539_s1] sm:$0xff] (!%p1140_p1), %vm575_vm3, %v725_v48 }
 0x444   : > { %v710_v49 = vpop.permute.xlu0 %709 }
 0x445   : > { %712 = vst.msk [vmem:[#allocation3] sm:$0xff] %vm575_vm3, %v710_v49  ;;  %805 = vst.msk [vmem:[%s546_s11] sm:$0xff] (!%p1140_p1), %vm575_vm3, %v710_v49 }
 0x511   : > { %802 = sbr.rel (%p1140_p1) target bundleno = 1304 (0x518), region = 76 }
 0x514   : > { %v794_v51 = vpop.f32.mrb[0].mxu1 }
 0x515   : > { %v795_v52 = vadd.f32 %v1138_v50, %v794_v51  ;;  %v1195_v53 = vpop.f32.mrb[1].mxu1 }
 0x517   : > { %798 = vst [vmem:[%s553_s23] sm:$0xff] %v795_v52 }
 0x518 PF: > { %s2476_s10 = sld [smem:[#allocation27_spill]]  ;;  %s2477_s7 = sld [smem:[#allocation35_spill]] }
 0x519   : > { %s2478_s27 = sld [smem:[#allocation44_spill]]  ;;  %s843_s17 = sshll.u32 %s546_s11, 4  ;;  %s844_s17 = int_to_ptr.vmem [resolvable:$true] %s843_s17 }
 0x51a   : > { %s812_s25 = scalar_lea.sflag [#allocation15], %s2154_s24  ;;  %s1513_s21 = scalar_lea.vmem %s844_s17, 128 }
 0x51b   : > { %p1514_p8 = scmp.ne.s32.totalorder %s844_s17, %s1513_s21  ;;  %s1723_s4 = smov [#allocation14]  }
 0x51c   : > { %s1517_s6 = sshll.u32 %s1723_s4, 4  ;;  %s1518_s6 = int_to_ptr.vmem [resolvable:$false] %s1517_s6 }
 0x51d   : > { %s1519_s22 = scalar_lea.vmem %s1518_s6, 256  ;;  %p1520_p4 = scmp.lt.s32.totalorder %s844_s17, %s1518_s6 }
 0x51e   : > { %s1144_s12 = sshll.u32 %s2476_s10, 7  ;;  %p2479_p9 = scmp.ne.s32.totalorder %s2477_s7, 0 }
 0x51f   : > { %s2244_s26 = scalar_lea.hbm %s2478_s27, %s1144_s12  ;;  %p1521_p11 = scmp.lt.s32.totalorder %s1519_s22, %s1513_s21 }
 0x520   : > { %p1515_p13 = pnand %p1514_p8, %p2479_p9 }
 0x521   : > { %p1522_p10 = por %p1521_p11, %p1520_p4 }
 0x522   : > { %p1516_p5 = pneg %p1515_p13 }
 0x524   : > { %p1523_p2 = pnand %p1522_p10, %p1516_p5 }
 0x526   : > { %1526 = shalt.err (!%p1523_p2)
}
 0x527   : > { %s1527_s11 = scalar_lea.hbm %s2244_s26, 128  ;;  %s1531_s30 = scalar_lea.hbm %s2478_s27, 384 }
 0x528   : > { %p1528_p7 = scmp.ne.s32.totalorder %s2244_s26, %s1527_s11  ;;  %p1532_p6 = scmp.lt.u32.totalorder %s2244_s26, %s2478_s27 }
 0x529   : > { %p1533_p3 = scmp.lt.u32.totalorder %s1531_s30, %s1527_s11  ;;  %p1535_p8 = scmp.lt.u32.totalorder %s1527_s11, %s2244_s26 }
 0x52a   : > { %p1529_p12 = pnand %p1528_p7, %p2479_p9 }
 0x52b   : > { %p1534_p1 = por %p1533_p3, %p1532_p6 }
 0x52c   : > { %p1530_p0 = pneg %p1529_p12 }
 0x52d   : > { %p1536_p13 = por %p1535_p8, %p1534_p1 }
 0x52f   : > { %p1537_p5 = pnand %p1536_p13, %p1530_p0 }
 0x531   : > { %1540 = shalt.err (!%p1537_p5)
}
 0x532   : > { %1225 = dma.vmem_to_hbm [thread:$0]  (%p2479_p9), %s844_s17, 128, %s2244_s26, %s812_s25  }
 0x533   : > { %s2480_s6 = sld [smem:[#allocation43_spill]]  ;;  %s830_s11 = sshll.u32 %s539_s1, 4  ;;  %s2277_s11 = int_to_ptr.vmem [resolvable:$true] %s830_s11 }
 0x534   : > { %s1146_s9 = sshll.u32 %s2476_s10, 3  ;;  %s807_s28 = scalar_lea.sflag [#allocation6], %s2157_s8 }
 0x535   : > { %s1541_s30 = scalar_lea.vmem %s2277_s11, 128  ;;  %s1724_s26 = smov [#allocation13]  }
 0x536   : > { %p1542_p4 = scmp.ne.s32.totalorder %s2277_s11, %s1541_s30  ;;  %s1545_s17 = sshll.u32 %s1724_s26, 4  ;;  %s1546_s17 = int_to_ptr.vmem [resolvable:$false] %s1545_s17 }
 0x537   : > { %s1547_s20 = scalar_lea.vmem %s1546_s17, 256  ;;  %p1548_p2 = scmp.lt.s32.totalorder %s2277_s11, %s1546_s17 }
 0x538   : > { %p1543_p11 = pnand %p1542_p4, %p2479_p9  ;;  %p1549_p7 = scmp.lt.s32.totalorder %s1547_s20, %s1541_s30 }
 0x539   : > { %s2273_s22 = scalar_lea.hbm %s2480_s6, %s1144_s12 }
 0x53a   : > { %p1544_p10 = pneg %p1543_p11  ;;  %p1550_p12 = por %p1549_p7, %p1548_p2 }
 0x53c   : > { %p1551_p0 = pnand %p1550_p12, %p1544_p10 }
 0x53e   : > { %1554 = shalt.err (!%p1551_p0)
}
 0x53f   : > { %s1555_s8 = scalar_lea.hbm %s2273_s22, 128  ;;  %s1559_s12 = scalar_lea.hbm %s2480_s6, 384 }
 0x540   : > { %p1556_p6 = scmp.ne.s32.totalorder %s2273_s22, %s1555_s8  ;;  %p1560_p8 = scmp.lt.u32.totalorder %s2273_s22, %s2480_s6 }
 0x541   : > { %p1561_p13 = scmp.lt.u32.totalorder %s1559_s12, %s1555_s8  ;;  %p1563_p4 = scmp.lt.u32.totalorder %s1555_s8, %s2273_s22 }
 0x542   : > { %p1557_p3 = pnand %p1556_p6, %p2479_p9 }
 0x543   : > { %p1562_p5 = por %p1561_p13, %p1560_p8 }
 0x544   : > { %p1558_p1 = pneg %p1557_p3 }
 0x545   : > { %p1564_p11 = por %p1563_p4, %p1562_p5 }
 0x547   : > { %p1565_p10 = pnand %p1564_p11, %p1558_p1 }
 0x549   : > { %1568 = shalt.err (!%p1565_p10)
}
 0x54a   : > { %s2481_s4 = sld [smem:[#allocation26_spill]]  ;;  %s858_s26 = sshll.u32 %s553_s23, 4  ;;  %s859_s26 = int_to_ptr.vmem [resolvable:$true] %s858_s26 }
 0x54b   : > { %1224 = dma.vmem_to_hbm [thread:$0]  (%p2479_p9), %s2277_s11, 128, %s2273_s22, %s807_s28  }
 0x54c   : > { %s2482_s3 = sld [smem:[#allocation45_spill]]  ;;  %s1569_s12 = scalar_lea.vmem %s859_s26, 128 }
 0x54d   : > { %p1570_p2 = scmp.ne.s32.totalorder %s859_s26, %s1569_s12  ;;  %p2483_p7 = scmp.ne.s32.totalorder %s2452_s29, 0 }
 0x54e   : > { %s1725_s7 = smov [#allocation16]  }
 0x54f   : > { %p1571_p12 = pnand %p1570_p2, %p2483_p7  ;;  %s1573_s18 = sshll.u32 %s1725_s7, 4  ;;  %s1574_s18 = int_to_ptr.vmem [resolvable:$false] %s1573_s18 }
 0x550   : > { %s854_s30 = sadd.s32 %s2481_s4, %s1146_s9  ;;  %s1575_s21 = scalar_lea.vmem %s1574_s18, 256 }
 0x551   : > { %s1147_s17 = sshll.u32 %s854_s30, 7  ;;  %p1572_p0 = pneg %p1571_p12 }
 0x552   : > { %s856_s1 = scalar_lea.hbm %s2482_s3, %s1147_s17  ;;  %p1576_p9 = scmp.lt.s32.totalorder %s859_s26, %s1574_s18 }
 0x553   : > { %p1577_p6 = scmp.lt.s32.totalorder %s1575_s21, %s1569_s12 }
 0x555   : > { %p1578_p3 = por %p1577_p6, %p1576_p9 }
 0x557   : > { %p1579_p1 = pnand %p1578_p3, %p1572_p0 }
 0x559   : > { %1582 = shalt.err (!%p1579_p1)
}
 0x55a   : > { %s1583_s15 = scalar_lea.hbm %s856_s1, 128  ;;  %s1587_s22 = scalar_lea.hbm %s2482_s3, 3072 }
 0x55b   : > { %p1584_p8 = scmp.ne.s32.totalorder %s856_s1, %s1583_s15  ;;  %p1588_p4 = scmp.lt.u32.totalorder %s856_s1, %s2482_s3 }
 0x55c   : > { %p1589_p11 = scmp.lt.u32.totalorder %s1587_s22, %s1583_s15  ;;  %p1591_p2 = scmp.lt.u32.totalorder %s1583_s15, %s856_s1 }
 0x55d   : > { %p1585_p13 = pnand %p1584_p8, %p2483_p7 }
 0x55e   : > { %p1590_p10 = por %p1589_p11, %p1588_p4 }
 0x55f   : > { %p1586_p5 = pneg %p1585_p13 }
 0x560   : > { %p1592_p12 = por %p1591_p2, %p1590_p10 }
 0x562   : > { %p1593_p0 = pnand %p1592_p12, %p1586_p5 }
 0x564   : > { %1596 = shalt.err (!%p1593_p0)
}
 0x565   : > { %1226 = dma.vmem_to_hbm [thread:$0]  (%p2483_p7), %s859_s26, 128, %s856_s1, %s812_s25  }
 0x566 PF: > { %s2484_s28 = sld [smem:[#allocation23_spill]]  ;;  %s2485_s4 = sld [smem:[#allocation36_spill]] }
 0x567   : > { %p1257_p9 = scmp.ge.s32.totalorder %s1707_s19, 2 }
 0x56c   : > { %s870_s30 = sand.u32 1, %s2484_s28   ;;  %p2486_p6 = scmp.ne.s32.totalorder %s2485_s4, 0 }
 0x56d   : > { %s871_s17 = scalar_lea.sflag [#allocation6], %s870_s30 }
 0x56e   : > { %p1247_p3 = pnand %p1257_p9, %p2486_p6 }
 0x570   : > { %1654 = dma.done.wait (!%p1247_p3), %s871_s17, 128  }
 0x571   : > { %1656 = vsyncadd (!%p1247_p3), %s871_s17, 4294967168  ;;  %s2487_s20 = sadd.s32 4294967294, %s1707_s19  }
 0x572   : > { %s879_s8 = sand.u32 1, %s2487_s20  }
 0x573   : > { %s880_s12 = scalar_lea.sflag [#allocation15], %s879_s8 }
 0x574   : > { %1658 = dma.done.wait (!%p1247_p3), %s880_s12, 128  }
 0x575   : > { %1660 = vsyncadd (!%p1247_p3), %s880_s12, 4294967168  ;;  %p2488_p1 = scmp.ne.s32.totalorder %s2454_s16, 0 }
 0x577   : > { %p1253_p7 = pnand %p1257_p9, %p2488_p1 }
 0x579   : > { %1662 = dma.done.wait (!%p1253_p7), %s880_s12, 128  }
 0x57a   : > { %1664 = vsyncadd (!%p1253_p7), %s880_s12, 4294967168  ;;  %s35_s19 = sadd.s32 1, %s1707_s19   ;;  %s2489_s30 = sld [smem:[#allocation24_spill]] }
 0x57b   : > { %p32_p8 = scmp.ge.s32.totalorder %s35_s19, 26   ;;  %s2490_s10 = sld [smem:[#allocation25_spill]] }
 0x57c   : > { %s2491_s11 = sld [smem:[#allocation37_spill]]  ;;  %s2492_s29 = sld [smem:[#allocation38_spill]] }
 0x57d   : > { %s2493_s15 = sld [smem:[#allocation28_spill]]  ;;  %s2494_s16 = sld [smem:[#allocation29_spill]] }
 0x57e   : > { %s2495_s17 = sld [smem:[#allocation31_spill]]  ;;  %s2496_s18 = sld [smem:[#allocation32_spill]] }
 0x57f   : > { %s2497_s12 = smov %s1683_s13  ;;  %s2498_s13 = smov %s1687_s14 }
 0x580   :  { %34 = sbr.rel (!%p32_p8) target bundleno = 23 (0x17), region = 187 }
 0x582   : > { %s2499_s14 = smov %s2492_s29 }
 0x587   :  { %894 = vsyncpa [#allocation5], 1 }
 0x588   :  { %896 = vsyncpa [#allocation5 + $0x1], 1 }
 0x589   :  { %897 = vsyncpa [#allocation8], 1 }
 0x58a   :  { %899 = vsyncpa [#allocation8 + $0x1], 1 }
 0x58b   :  { %900 = vsyncpa [#allocation11], 1 }
 0x58c   :  { %902 = vsyncpa [#allocation11 + $0x1], 1 }
 0x58d   :  { %903 = vsyncpa [#allocation6], 1 }
 0x58e   :  { %905 = vsyncpa [#allocation6 + $0x1], 1 }
 0x58f   :  { %906 = vsyncpa [#allocation15], 1 }
 0x590   :  { %908 = vsyncpa [#allocation15 + $0x1], 1 }

</bundles_post_ra>
